<compile_context>
chip_gen: v6e
topology: v6e:2x2x1
jax: 0.10.0
libtpu: 0.0.40
codegen_flags: <defaults>
</compile_context>

<pallas_src>
import functools

import jax
import jax.numpy as jnp
from jax import lax
from jax.experimental import pallas as pl
from jax.experimental.pallas import tpu as pltpu

# Keep the pure-JAX reference at full f32 matmul precision so it matches the
# in-kernel f32 MXU math.
jax.config.update("jax_default_matmul_precision", "highest")


# ----------------------------------------------------------------------------
# K1: per-node projections (hoisted out of the per-edge work).
# ----------------------------------------------------------------------------
def node_precompute_kernel(x_ref, whu_ref, whw_ref, ws_ref, wt_ref, wnode_ref,
                           src_tab_ref, tgt_tab_ref, wx_ref):
    x = x_ref[...]
    hu = jnp.dot(x, whu_ref[...], preferred_element_type=jnp.float32)   # [N, D]
    hw = jnp.dot(x, whw_ref[...], preferred_element_type=jnp.float32)   # [N, D]
    xs = jnp.dot(x, ws_ref[...], preferred_element_type=jnp.float32)    # [N, HF]
    xt = jnp.dot(x, wt_ref[...], preferred_element_type=jnp.float32)    # [N, HF]
    src_tab_ref[...] = jnp.concatenate([hu, xs], axis=1)                # gathered by src
    tgt_tab_ref[...] = jnp.concatenate([hw, xt], axis=1)                # gathered by tgt
    wx_ref[...] = jnp.dot(x, wnode_ref[...], preferred_element_type=jnp.float32)


# ----------------------------------------------------------------------------
# K2: per-edge messages / attributes / attention logits + scatter-max.
# ----------------------------------------------------------------------------
def edge_pass_a_kernel(src_ref, tgt_ref,                     # scalar prefetch (SMEM)
                       ea_ref, stab_ref, ttab_ref,
                       wemp_ref, wlm_ref, weatt_ref, batt_ref, attsel_ref,
                       msg_ref, attrib_ref, logit_ref, nmax_ref,
                       g_src, g_tgt,
                       *, te, d, e_real, slope_mp, slope_att):
    i = pl.program_id(0)

    @pl.when(i == 0)
    def _():
        nmax_ref[...] = jnp.full_like(nmax_ref, -1e30)

    # --- gather pre-projected node rows for this edge tile (indices in SMEM) ---
    def gather(e, carry):
        s = src_ref[i * te + e]
        t = tgt_ref[i * te + e]
        g_src[pl.ds(e, 1), :] = stab_ref[pl.ds(s, 1), :]
        g_tgt[pl.ds(e, 1), :] = ttab_ref[pl.ds(t, 1), :]
        return carry
    lax.fori_loop(0, te, gather, 0, unroll=True)

    ea = ea_ref[...]                                # [te, De]
    gs = g_src[...]
    gt = g_tgt[...]
    hu = gs[:, :d]                                  # W_hu @ x[src]
    xs = gs[:, d:]                                  # W_s  @ x[src]
    hw = gt[:, :d]                                  # W_hw @ x[tgt]
    xt = gt[:, d:]                                  # W_t  @ x[tgt]

    # messages = LeakyReLU_0.01(W_e(edge_attr) + W_hu(x[src]) + W_hw(x[tgt]))
    m = jnp.dot(ea, wemp_ref[...], preferred_element_type=jnp.float32) + hu + hw
    m = jnp.where(m >= 0, m, slope_mp * m)
    # attributes = lin_mes(edge_attr + messages)
    attrib = jnp.dot(ea + m, wlm_ref[...], preferred_element_type=jnp.float32)
    # GAT logits: per-head (s * att).sum(-1) folded into one matmul via the
    # block-diagonal att selector [HF, H].
    z = xs + xt + jnp.dot(attrib, weatt_ref[...],
                          preferred_element_type=jnp.float32) + batt_ref[...]
    z = jnp.where(z >= 0, z, slope_att * z)
    logits = jnp.dot(z, attsel_ref[...], preferred_element_type=jnp.float32)  # [te, H]

    # Mask padded edges so they cannot perturb the segment max.
    rows = i * te + lax.broadcasted_iota(jnp.int32, (te, 1), 0)
    valid = rows < e_real
    logits = jnp.where(valid, logits, jnp.float32(-1e30))

    msg_ref[...] = m
    attrib_ref[...] = attrib
    logit_ref[...] = logits

    # --- scatter-max into per-target-node accumulator ---
    def scatter_max(e, carry):
        t = tgt_ref[i * te + e]
        cur = nmax_ref[pl.ds(t, 1), :]
        nmax_ref[pl.ds(t, 1), :] = jnp.maximum(cur, logit_ref[pl.ds(e, 1), :])
        return carry
    lax.fori_loop(0, te, scatter_max, 0, unroll=True)


# ----------------------------------------------------------------------------
# K3: scatter-add of exp(logit - seg_max) -> per-node softmax denominator.
# ----------------------------------------------------------------------------
def edge_pass_b_kernel(tgt_ref, logit_ref, nmax_ref, nsum_ref,
                       g_m, ex_scr, *, te, e_real):
    i = pl.program_id(0)

    @pl.when(i == 0)
    def _():
        nsum_ref[...] = jnp.zeros_like(nsum_ref)

    def gather(e, carry):
        t = tgt_ref[i * te + e]
        g_m[pl.ds(e, 1), :] = nmax_ref[pl.ds(t, 1), :]
        return carry
    lax.fori_loop(0, te, gather, 0, unroll=True)

    rows = i * te + lax.broadcasted_iota(jnp.int32, (te, 1), 0)
    valid = rows < e_real
    ex = jnp.exp(logit_ref[...] - g_m[...])
    ex_scr[...] = jnp.where(valid, ex, 0.0)

    def scatter_add(e, carry):
        t = tgt_ref[i * te + e]
        nsum_ref[pl.ds(t, 1), :] = nsum_ref[pl.ds(t, 1), :] + ex_scr[pl.ds(e, 1), :]
        return carry
    lax.fori_loop(0, te, scatter_add, 0, unroll=True)


# ----------------------------------------------------------------------------
# K4: alpha = softmax, head-mean(alpha) * message, scatter-add aggregation.
# ----------------------------------------------------------------------------
def edge_pass_c_kernel(tgt_ref, logit_ref, msg_ref, nmax_ref, nsum_ref,
                       agg_ref, g_m, g_s, wm_scr, *, te, e_real):
    i = pl.program_id(0)

    @pl.when(i == 0)
    def _():
        agg_ref[...] = jnp.zeros_like(agg_ref)

    def gather(e, carry):
        t = tgt_ref[i * te + e]
        g_m[pl.ds(e, 1), :] = nmax_ref[pl.ds(t, 1), :]
        g_s[pl.ds(e, 1), :] = nsum_ref[pl.ds(t, 1), :]
        return carry
    lax.fori_loop(0, te, gather, 0, unroll=True)

    alpha = jnp.exp(logit_ref[...] - g_m[...]) / (g_s[...] + 1e-16)    # [te, H]
    # mean over heads of (alpha_h * message) == mean_h(alpha) * message
    wbar = jnp.mean(alpha, axis=1, keepdims=True)                       # [te, 1]
    wmsg = wbar * msg_ref[...]                                          # [te, D]

    rows = i * te + lax.broadcasted_iota(jnp.int32, (te, 1), 0)
    valid = rows < e_real
    wm_scr[...] = jnp.where(valid, wmsg, 0.0)

    def scatter_add(e, carry):
        t = tgt_ref[i * te + e]
        agg_ref[pl.ds(t, 1), :] = agg_ref[pl.ds(t, 1), :] + wm_scr[pl.ds(e, 1), :]
        return carry
    lax.fori_loop(0, te, scatter_add, 0, unroll=True)


# ----------------------------------------------------------------------------
# K5: final node update.
# ----------------------------------------------------------------------------
def node_update_kernel(x_ref, wx_ref, agg_ref, wlm_ref, emb_ref, *, slope):
    lin = jnp.dot(agg_ref[...], wlm_ref[...], preferred_element_type=jnp.float32)
    v = wx_ref[...] + lin
    emb_ref[...] = x_ref[...] + jnp.where(v >= 0, v, slope * v)


# ----------------------------------------------------------------------------
# Wrapper: full GNN_Layer2 forward.
# ----------------------------------------------------------------------------
def gnn_layer2_forward(x, edge_index, edge_attr, params, *, num_heads, edge_tile=8):
    (W_hu_T, W_hw_T, W_e_mp_T, W_lm_T, W_node_T,
     W_s, W_t, W_e_att_T, b_att, att) = params

    N, D = x.shape
    E = edge_index.shape[1]
    De = edge_attr.shape[1]
    H = num_heads
    F = D                       # GATAttention(features=node_dim)
    HF = H * F
    te = edge_tile

    x = x.astype(jnp.float32)
    edge_attr = edge_attr.astype(jnp.float32)

    # --- pad the edge set to a multiple of the edge tile (masked in-kernel) ---
    E_pad = ((E + te - 1) // te) * te
    pad = E_pad - E
    src = jnp.pad(edge_index[0].astype(jnp.int32), (0, pad))
    tgt = jnp.pad(edge_index[1].astype(jnp.int32), (0, pad))
    ea = jnp.pad(edge_attr, ((0, pad), (0, 0)))
    n_tiles = E_pad // te

    # Block-diagonal att selector: logits = LeakyReLU(z) @ att_sel  ([E,HF]@[HF,H]).
    att_sel = (att.reshape(H, F)[:, :, None]
               * jnp.eye(H, dtype=jnp.float32)[:, None, :]).reshape(HF, H)

    vmem = pl.BlockSpec(memory_space=pltpu.MemorySpace.VMEM)
    arb = pltpu.CompilerParams(dimension_semantics=("arbitrary",),
                               vmem_limit_bytes=32 * 1024 * 1024)

    # --- K1: node precompute ---
    src_tab, tgt_tab, wx = pl.pallas_call(
        node_precompute_kernel,
        out_shape=(jax.ShapeDtypeStruct((N, D + HF), jnp.float32),
                   jax.ShapeDtypeStruct((N, D + HF), jnp.float32),
                   jax.ShapeDtypeStruct((N, D), jnp.float32)),
        in_specs=[vmem] * 6,
        out_specs=(vmem, vmem, vmem),
    )(x, W_hu_T, W_hw_T, W_s, W_t, W_node_T)

    # --- K2: edge pass A ---
    kernel_a = functools.partial(edge_pass_a_kernel, te=te, d=D, e_real=E,
                                 slope_mp=0.01, slope_att=0.2)
    grid_a = pltpu.PrefetchScalarGridSpec(
        num_scalar_prefetch=2, grid=(n_tiles,),
        in_specs=[
            pl.BlockSpec((te, De), lambda i, s, t: (i, 0)),      # edge_attr tile
            pl.BlockSpec((N, D + HF), lambda i, s, t: (0, 0)),   # src table
            pl.BlockSpec((N, D + HF), lambda i, s, t: (0, 0)),   # tgt table
            pl.BlockSpec((De, D), lambda i, s, t: (0, 0)),       # W_e (message passing)
            pl.BlockSpec((D, De), lambda i, s, t: (0, 0)),       # lin_mes
            pl.BlockSpec((De, HF), lambda i, s, t: (0, 0)),      # edge_embedding W
            pl.BlockSpec((1, HF), lambda i, s, t: (0, 0)),       # edge_embedding b
            pl.BlockSpec((HF, H), lambda i, s, t: (0, 0)),       # att selector
        ],
        out_specs=[
            pl.BlockSpec((te, D), lambda i, s, t: (i, 0)),       # messages
            pl.BlockSpec((te, De), lambda i, s, t: (i, 0)),      # attributes
            pl.BlockSpec((te, H), lambda i, s, t: (i, 0)),       # logits
            pl.BlockSpec((N, H), lambda i, s, t: (0, 0)),        # seg-max accumulator
        ],
        scratch_shapes=[pltpu.VMEM((te, D + HF), jnp.float32),
                        pltpu.VMEM((te, D + HF), jnp.float32)],
    )
    messages, attributes_pad, logits, nmax = pl.pallas_call(
        kernel_a, grid_spec=grid_a,
        out_shape=(jax.ShapeDtypeStruct((E_pad, D), jnp.float32),
                   jax.ShapeDtypeStruct((E_pad, De), jnp.float32),
                   jax.ShapeDtypeStruct((E_pad, H), jnp.float32),
                   jax.ShapeDtypeStruct((N, H), jnp.float32)),
        compiler_params=arb,
    )(src, tgt, ea, src_tab, tgt_tab,
      W_e_mp_T, W_lm_T, W_e_att_T, b_att.reshape(1, HF), att_sel)

    # --- K3: edge pass B (softmax denominators) ---
    kernel_b = functools.partial(edge_pass_b_kernel, te=te, e_real=E)
    grid_b = pltpu.PrefetchScalarGridSpec(
        num_scalar_prefetch=1, grid=(n_tiles,),
        in_specs=[pl.BlockSpec((te, H), lambda i, t: (i, 0)),
                  pl.BlockSpec((N, H), lambda i, t: (0, 0))],
        out_specs=pl.BlockSpec((N, H), lambda i, t: (0, 0)),
        scratch_shapes=[pltpu.VMEM((te, H), jnp.float32),
                        pltpu.VMEM((te, H), jnp.float32)],
    )
    nsum = pl.pallas_call(
        kernel_b, grid_spec=grid_b,
        out_shape=jax.ShapeDtypeStruct((N, H), jnp.float32),
        compiler_params=arb,
    )(tgt, logits, nmax)

    # --- K4: edge pass C (normalize + weighted-message aggregation) ---
    kernel_c = functools.partial(edge_pass_c_kernel, te=te, e_real=E)
    grid_c = pltpu.PrefetchScalarGridSpec(
        num_scalar_prefetch=1, grid=(n_tiles,),
        in_specs=[pl.BlockSpec((te, H), lambda i, t: (i, 0)),
                  pl.BlockSpec((te, D), lambda i, t: (i, 0)),
                  pl.BlockSpec((N, H), lambda i, t: (0, 0)),
                  pl.BlockSpec((N, H), lambda i, t: (0, 0))],
        out_specs=pl.BlockSpec((N, D), lambda i, t: (0, 0)),
        scratch_shapes=[pltpu.VMEM((te, H), jnp.float32),
                        pltpu.VMEM((te, H), jnp.float32),
                        pltpu.VMEM((te, D), jnp.float32)],
    )
    node_agg = pl.pallas_call(
        kernel_c, grid_spec=grid_c,
        out_shape=jax.ShapeDtypeStruct((N, D), jnp.float32),
        compiler_params=arb,
    )(tgt, logits, messages, nmax, nsum)

    # --- K5: final node update ---
    embeddings = pl.pallas_call(
        functools.partial(node_update_kernel, slope=0.01),
        out_shape=jax.ShapeDtypeStruct((N, D), jnp.float32),
        in_specs=[vmem] * 4,
        out_specs=vmem,
    )(x, wx, node_agg, W_lm_T)

    return embeddings, attributes_pad[:E]


# ----------------------------------------------------------------------------
# Pure-JAX reference (matches the intended PyTorch forward).
# ----------------------------------------------------------------------------
def gnn_layer2_reference(x, edge_index, edge_attr, params, *, num_heads):
    (W_hu_T, W_hw_T, W_e_mp_T, W_lm_T, W_node_T,
     W_s, W_t, W_e_att_T, b_att, att) = params
    H = num_heads
    N, D = x.shape
    F = D
    src, tgt = edge_index[0], edge_index[1]
    lrelu = lambda v, s: jnp.where(v >= 0, v, s * v)

    messages = lrelu(edge_attr @ W_e_mp_T + x[src] @ W_hu_T + x[tgt] @ W_hw_T, 0.01)
    attributes = (edge_attr + messages) @ W_lm_T

    x_i = (x[src] @ W_s).reshape(-1, H, F)
    x_j = (x[tgt] @ W_t).reshape(-1, H, F)
    e_ij = (attributes @ W_e_att_T + b_att).reshape(-1, H, F)
    s = lrelu(x_i + x_j + e_ij, 0.2)
    alpha = (s * att).sum(-1)
    seg_max = jax.ops.segment_max(alpha, tgt, num_segments=N)
    ex = jnp.exp(alpha - seg_max[tgt])
    seg_sum = jax.ops.segment_sum(ex, tgt, num_segments=N)
    alpha = ex / (seg_sum[tgt] + 1e-16)

    weighted = alpha[:, :, None] * messages[:, None, :]                 # [E, H, D]
    agg = jax.ops.segment_sum(weighted, tgt, num_segments=N).mean(axis=1)
    agg = agg @ W_lm_T
    embeddings = x + lrelu(x @ W_node_T + agg, 0.01)
    return embeddings, attributes


def _kaiming_uniform(key, shape, fan_in, a=0.01):
    gain = (2.0 / (1.0 + a * a)) ** 0.5
    bound = gain * (3.0 / fan_in) ** 0.5
    return jax.random.uniform(key, shape, jnp.float32, -bound, bound)


if __name__ == "__main__":
    # GNN_Layer2 only type-checks when node_dim == edge_dim.
    node_dim = 8
    edge_dim = 8
    heads = 4
    N, E = 10, 19                  # E not a multiple of the edge tile -> exercises masking

    D, De, H = node_dim, edge_dim, heads
    F, HF = D, heads * D

    key = jax.random.PRNGKey(0)
    ks = jax.random.split(key, 12)

    W_hu_T = _kaiming_uniform(ks[0], (D, D), D)
    W_hw_T = _kaiming_uniform(ks[1], (D, D), D)
    W_e_mp_T = _kaiming_uniform(ks[2], (De, D), De)
    W_lm_T = _kaiming_uniform(ks[3], (D, De), D)
    W_node_T = _kaiming_uniform(ks[4], (D, D), D)
    W_s = _kaiming_uniform(ks[5], (D, HF), HF)
    W_t = _kaiming_uniform(ks[6], (D, HF), HF)
    W_e_att_T = _kaiming_uniform(ks[7], (De, HF), De)
    b_bound = 1.0 / (De ** 0.5)
    b_att = jax.random.uniform(ks[8], (HF,), jnp.float32, -b_bound, b_bound)
    att = _kaiming_uniform(ks[9], (1, H, F), H * F)
    params = (W_hu_T, W_hw_T, W_e_mp_T, W_lm_T, W_node_T,
              W_s, W_t, W_e_att_T, b_att, att)

    x = jax.random.normal(ks[10], (N, D), jnp.float32)
    edge_attr = jax.random.normal(ks[11], (E, De), jnp.float32)
    edge_index = jax.random.randint(jax.random.fold_in(key, 99), (2, E), 0, N,
                                    dtype=jnp.int32)

    emb, attrib = gnn_layer2_forward(x, edge_index, edge_attr, params,
                                     num_heads=H, edge_tile=8)
    emb = jax.block_until_ready(emb)
    attrib = jax.block_until_ready(attrib)

    emb_ref, attrib_ref = gnn_layer2_reference(x, edge_index, edge_attr, params,
                                               num_heads=H)
    assert emb.shape == (N, D) and attrib.shape == (E, De)
    err_e = jnp.max(jnp.abs(emb - emb_ref))
    err_a = jnp.max(jnp.abs(attrib - attrib_ref))
    assert jnp.allclose(attrib, attrib_ref, atol=1e-3, rtol=1e-3), (
        f"attributes max abs err {err_a}")
    assert jnp.allclose(emb, emb_ref, atol=1e-3, rtol=1e-3), (
        f"embeddings max abs err {err_e}")

    print("KERNEL_OK")
</pallas_src>

<mosaic_0001>
module attributes {stable_mosaic.version = 11 : i64} {
  func.func @node_precompute_kernel(%arg0: memref<10x8xf32, #tpu.memory_space<vmem>>, %arg1: memref<8x8xf32, #tpu.memory_space<vmem>>, %arg2: memref<8x8xf32, #tpu.memory_space<vmem>>, %arg3: memref<8x32xf32, #tpu.memory_space<vmem>>, %arg4: memref<8x32xf32, #tpu.memory_space<vmem>>, %arg5: memref<8x8xf32, #tpu.memory_space<vmem>>, %arg6: memref<10x40xf32, #tpu.memory_space<vmem>>, %arg7: memref<10x40xf32, #tpu.memory_space<vmem>>, %arg8: memref<10x8xf32, #tpu.memory_space<vmem>>) attributes {dimension_semantics = [], scalar_prefetch = 0 : i64, scratch_operands = 0 : i64, tpu.core_type = #tpu.core_type<tc>} {
    %c0 = arith.constant 0 : index
    %c0_0 = arith.constant 0 : index
    %0 = vector.load %arg0[%c0, %c0_0] : memref<10x8xf32, #tpu.memory_space<vmem>>, vector<10x8xf32>
    %c0_1 = arith.constant 0 : index
    %c0_2 = arith.constant 0 : index
    %1 = vector.load %arg1[%c0_1, %c0_2] : memref<8x8xf32, #tpu.memory_space<vmem>>, vector<8x8xf32>
    %cst = arith.constant dense<0.000000e+00> : vector<10x8xf32>
    %2 = tpu.matmul %0, %1, %cst {dimension_numbers = #tpu.dot_dimension_numbers<[1], [0], [0], [1], [0, 0, 1, 1], [], []>, precision = #tpu.contract_precision<fp32>} : vector<10x8xf32>, vector<8x8xf32>, vector<10x8xf32> -> vector<10x8xf32>
    %c0_3 = arith.constant 0 : index
    %c0_4 = arith.constant 0 : index
    %3 = vector.load %arg2[%c0_3, %c0_4] : memref<8x8xf32, #tpu.memory_space<vmem>>, vector<8x8xf32>
    %cst_5 = arith.constant dense<0.000000e+00> : vector<10x8xf32>
    %4 = tpu.matmul %0, %3, %cst_5 {dimension_numbers = #tpu.dot_dimension_numbers<[1], [0], [0], [1], [0, 0, 1, 1], [], []>, precision = #tpu.contract_precision<fp32>} : vector<10x8xf32>, vector<8x8xf32>, vector<10x8xf32> -> vector<10x8xf32>
    %c0_6 = arith.constant 0 : index
    %c0_7 = arith.constant 0 : index
    %5 = vector.load %arg3[%c0_6, %c0_7] : memref<8x32xf32, #tpu.memory_space<vmem>>, vector<8x32xf32>
    %cst_8 = arith.constant dense<0.000000e+00> : vector<10x32xf32>
    %6 = tpu.matmul %0, %5, %cst_8 {dimension_numbers = #tpu.dot_dimension_numbers<[1], [0], [0], [1], [0, 0, 1, 1], [], []>, precision = #tpu.contract_precision<fp32>} : vector<10x8xf32>, vector<8x32xf32>, vector<10x32xf32> -> vector<10x32xf32>
    %c0_9 = arith.constant 0 : index
    %c0_10 = arith.constant 0 : index
    %7 = vector.load %arg4[%c0_9, %c0_10] : memref<8x32xf32, #tpu.memory_space<vmem>>, vector<8x32xf32>
    %cst_11 = arith.constant dense<0.000000e+00> : vector<10x32xf32>
    %8 = tpu.matmul %0, %7, %cst_11 {dimension_numbers = #tpu.dot_dimension_numbers<[1], [0], [0], [1], [0, 0, 1, 1], [], []>, precision = #tpu.contract_precision<fp32>} : vector<10x8xf32>, vector<8x32xf32>, vector<10x32xf32> -> vector<10x32xf32>
    %9 = tpu.concatenate %2, %6 in 1 : vector<10x8xf32>, vector<10x32xf32> -> vector<10x40xf32>
    %c0_12 = arith.constant 0 : index
    %c0_13 = arith.constant 0 : index
    %10 = vector.load %arg6[%c0_12, %c0_13] : memref<10x40xf32, #tpu.memory_space<vmem>>, vector<10x40xf32>
    tpu.vector_store %arg6[%c0_12, %c0_13], %9 {strides = array<i32>} : memref<10x40xf32, #tpu.memory_space<vmem>>, vector<10x40xf32>,
    %11 = tpu.concatenate %4, %8 in 1 : vector<10x8xf32>, vector<10x32xf32> -> vector<10x40xf32>
    %c0_14 = arith.constant 0 : index
    %c0_15 = arith.constant 0 : index
    %12 = vector.load %arg7[%c0_14, %c0_15] : memref<10x40xf32, #tpu.memory_space<vmem>>, vector<10x40xf32>
    tpu.vector_store %arg7[%c0_14, %c0_15], %11 {strides = array<i32>} : memref<10x40xf32, #tpu.memory_space<vmem>>, vector<10x40xf32>,
    %c0_16 = arith.constant 0 : index
    %c0_17 = arith.constant 0 : index
    %13 = vector.load %arg5[%c0_16, %c0_17] : memref<8x8xf32, #tpu.memory_space<vmem>>, vector<8x8xf32>
    %cst_18 = arith.constant dense<0.000000e+00> : vector<10x8xf32>
    %14 = tpu.matmul %0, %13, %cst_18 {dimension_numbers = #tpu.dot_dimension_numbers<[1], [0], [0], [1], [0, 0, 1, 1], [], []>, precision = #tpu.contract_precision<fp32>} : vector<10x8xf32>, vector<8x8xf32>, vector<10x8xf32> -> vector<10x8xf32>
    %c0_19 = arith.constant 0 : index
    %c0_20 = arith.constant 0 : index
    %15 = vector.load %arg8[%c0_19, %c0_20] : memref<10x8xf32, #tpu.memory_space<vmem>>, vector<10x8xf32>
    tpu.vector_store %arg8[%c0_19, %c0_20], %14 {strides = array<i32>} : memref<10x8xf32, #tpu.memory_space<vmem>>, vector<10x8xf32>,
    return
  }
}

</mosaic_0001>

<bundles_post_ra>
// kernel: tpu_custom_call.1
= control target key start
LH: loop header
LB: loop body
LE: loop exit
PB: predicated region body
PF: predicated region fallthrough
CT: control target
= control target key end

     0   :  { %14 = vsyncpa [#allocation3], 0  ;;  %s3099_s0 = inlined_call_operand.vmem [shape: f32[10,8], index: 0, kind: input, shape index: {}]   ;;  %s3100_s1 = inlined_call_operand.vmem [shape: f32[8,8], index: 1, kind: input, shape index: {}]   ;;  %s3101_s2 = inlined_call_operand.vmem [shape: f32[8,8], index: 2, kind: input, shape index: {}]   ;;  %s3102_s3 = inlined_call_operand.vmem [shape: f32[8,32], index: 3, kind: input, shape index: {}]   ;;  %s3103_s4 = inlined_call_operand.hbm [shape: f32[8,32], index: 4, kind: input, shape index: {}]   ;;  %s3104_s5 = inlined_call_operand.vmem [shape: f32[8,8], index: 5, kind: input, shape index: {}]   ;;  %s3105_s6 = inlined_call_operand.hbm [shape: f32[10,40], index: 6, kind: output, shape index: {0}]   ;;  %s3106_s7 = inlined_call_operand.hbm [shape: f32[10,40], index: 7, kind: output, shape index: {1}]   ;;  %s3107_s8 = inlined_call_operand.vmem [shape: f32[10,8], index: 8, kind: output, shape index: {2}]  }
   0x1   :  { %15 = vsyncpa [#allocation4], 0 }
   0x2   :  { %16 = vsyncpa [#allocation7], 0  ;;  %s2876_s27 = smov [#allocation2]  }
   0x3   :  { %s31_s28 = sshll.u32 %s2876_s27, 4  ;;  %s32_s28 = int_to_ptr.vmem [resolvable:$true] %s31_s28 }
   0x4   :  { %s2818_s29 = scalar_lea.vmem %s32_s28, 128  ;;  %p2823_p1 = scmp.lt.s32.totalorder %s32_s28, %s32_s28 }
   0x5   :  { %p2819_p0 = scmp.ne.s32.totalorder %s32_s28, %s2818_s29  ;;  %p2824_p2 = scmp.lt.s32.totalorder %s2818_s29, %s2818_s29 }
   0x7   :  { %p2825_p3 = por %p2824_p2, %p2823_p1 }
   0x9   :  { %p2826_p4 = pnand %p2825_p3, %p2819_p0 }
   0xb   :  { %2829 = shalt.err (!%p2826_p4)
}
   0xc   :  { %34 = dma.hbm_to_vmem [thread:$0]  %s3103_s4, 128, %s32_s28, [#allocation3]  }
   0xd   :  { %2870 = dma.done.wait [#allocation3], 128  }
   0xe   :  { %2871 = vsyncadd [#allocation3], 4294967168  ;;  %vm43_vm0 = vcmask 64512   ;;  %v42_v0 = vld [vmem:[%s3100_s1] sm:$0xff]  ;;  %v41_v2 = vld [vmem:[%s3099_s0 + $0x8] sm:$0x3] }
   0xf   :  { %v40_v1 = vld [vmem:[%s3099_s0] sm:$0xff]  ;;  %v81_v3 = vand.u32 4294901760, %v42_v0  ;;  %v48_v5 = vsel %vm43_vm0, %v41_v2, 0  ;;  %vm2526_vm1 = vcmask 58368   ;;  %vm2019_vm2 = vcmask 326656   ;;  %s2878_s21 = smov [#allocation5]  }
  0x10   :  { %v45_v4 = vsel %vm43_vm0, %v40_v1, 0  ;;  %v539_v6 = vld [vmem:[%s3101_s2] sm:$0xff]  ;;  %v2945_v8 = vand.u32 4294901760, %v48_v5  ;;  %s2533_s22 = sshll.u32 %s2878_s21, 4  ;;  %vm2021_vm3 = vcmask 320512   ;;  %s2534_s22 = int_to_ptr.vmem [resolvable:$true] %s2533_s22 }
  0x11   :  { %v2943_v7 = vand.u32 4294901760, %v45_v4  ;;  %v2947_v9 = vand.u32 4294901760, %v539_v6  ;;  %2655 = vmatprep.subr.mxu0 %v81_v3  ;;  %v168_v10 = vsub.f32 %v42_v0, %v81_v3  ;;  %v1029_v24 = vld [vmem:[%s3102_s3] sm:$0xff]  ;;  %s2830_s23 = scalar_lea.vmem %s2534_s22, 256  ;;  %p2835_p6 = scmp.lt.s32.totalorder %s2534_s22, %s2534_s22 }
  0x12   :  { %2656 = vmatpush3.msra.mxu0 %v81_v3  ;;  %v2954_v12 = vsub.f32 %v48_v5, %v2945_v8  ;;  %v2977_v26 = vand.u32 4294901760, %v1029_v24  ;;  %v1519_v30 = vld [vmem:[#allocation2] sm:$0xff]  ;;  %p2831_p5 = scmp.ne.s32.totalorder %s2534_s22, %s2830_s23  ;;  %p2836_p7 = scmp.lt.s32.totalorder %s2830_s23, %s2830_s23 }
  0x13   :  { %v2950_v11 = vsub.f32 %v45_v4, %v2943_v7  ;;  %2662 = vmatprep.mubr.f32.mxu1 %v2943_v7  ;;  %v169_v13 = vand.u32 4294901760, %v168_v10  ;;  %2665 = vmatprep.subr.mxu0 %v168_v10  ;;  %v658_v16 = vsub.f32 %v539_v6, %v2947_v9  ;;  %v2995_v32 = vand.u32 4294901760, %v1519_v30  ;;  %v2035_v36 = vld [vmem:[%s3104_s5] sm:$0xff]  ;;  %s2877_s5 = smov 8  }
  0x14   :  { %v2960_v15 = vand.u32 4294901760, %v2954_v12  ;;  %v1148_v28 = vsub.f32 %v1029_v24, %v2977_v26  ;;  %v2067_v38 = vand.u32 4294901760, %v2035_v36  ;;  %p2837_p8 = por %p2836_p7, %p2835_p6 }
  0x15   :  { %v2957_v14 = vand.u32 4294901760, %v2950_v11  ;;  %v170_v17 = vsub.f32 %v168_v10, %v169_v13  ;;  %v659_v23 = vand.u32 4294901760, %v658_v16  ;;  %v1638_v34 = vsub.f32 %v1519_v30, %v2995_v32 }
  0x16   :  { %v129_v19 = vsub.f32 %v2954_v12, %v2960_v15  ;;  %v1149_v29 = vand.u32 4294901760, %v1148_v28  ;;  %v2154_v40 = vsub.f32 %v2035_v36, %v2067_v38  ;;  %p2838_p9 = pnand %p2837_p8, %p2831_p5 }
  0x17   :  { %v119_v18 = vsub.f32 %v2950_v11, %v2957_v14  ;;  %v171_v20 = vand.u32 4294901760, %v170_v17  ;;  %v660_v25 = vsub.f32 %v658_v16, %v659_v23  ;;  %v1639_v35 = vand.u32 4294901760, %v1638_v34 }
  0x18   :  { %v2969_v22 = vand.u32 4294901760, %v129_v19  ;;  %v1150_v31 = vsub.f32 %v1148_v28, %v1149_v29  ;;  %v2155_v41 = vand.u32 4294901760, %v2154_v40 }
  0x19   :  { %v2967_v21 = vand.u32 4294901760, %v119_v18  ;;  %2660 = vmatprep.subr.mxu1 %v171_v20  ;;  %v661_v27 = vand.u32 4294901760, %v660_v25  ;;  %v1640_v37 = vsub.f32 %v1638_v34, %v1639_v35 }
  0x1a   :  { %2661 = vmatpush3.msra.mxu1 %v171_v20  ;;  %v1151_v33 = vand.u32 4294901760, %v1150_v31  ;;  %v2156_v42 = vsub.f32 %v2154_v40, %v2155_v41 }
  0x1b   :  { %2657 = vmatprep.mubr.f32.mxu0 %v2967_v21  ;;  %2663 = vmatmul.mubr.f32.vlgmr.msra.gmra.mxu1 %v2945_v8  ;;  %v1641_v39 = vand.u32 4294901760, %v1640_v37 }
  0x1c   :  { %2658 = vmatmul.mubr.f32.vlgmr.msra.gmra.mxu0 %v2969_v22  ;;  %2670 = vmatprep.subr.mxu1 %v81_v3  ;;  %v2157_v43 = vand.u32 4294901760, %v2156_v42 }
  0x1d   :  { %2666 = vmatpush3.msra.mxu0 %v168_v10  ;;  %2671 = vmatpush3.msra.mxu1 %v81_v3 }
  0x1e   :  { %2667 = vmatprep.mubr.f32.mxu0 %v2950_v11  ;;  %2672 = vmatprep.mubr.f32.mxu1 %v2957_v14 }
  0x1f   :  { %2675 = vmatprep.subr.mxu0 %v169_v13  ;;  %2673 = vmatmul.mubr.f32.vlgmr.msra.gmra.mxu1 %v2960_v15 }
  0x20   :  { %2668 = vmatmul.mubr.f32.vlgmr.msra.gmra.mxu0 %v2954_v12  ;;  %2680 = vmatprep.subr.mxu1 %v81_v3 }
  0x21   :  { %2676 = vmatpush3.msra.mxu0 %v169_v13  ;;  %2681 = vmatpush3.msra.mxu1 %v81_v3 }
  0x22   :  { %2677 = vmatprep.mubr.f32.mxu0 %v2943_v7  ;;  %2682 = vmatprep.mubr.f32.mxu1 %v2943_v7 }
  0x23   :  { %2685 = vmatprep.subr.mxu0 %v2947_v9  ;;  %2683 = vmatmul.mubr.f32.vlgmr.msra.gmra.mxu1 %v2945_v8 }
  0x24   :  { %2678 = vmatmul.mubr.f32.vlgmr.msra.gmra.mxu0 %v2945_v8  ;;  %2690 = vmatprep.subr.mxu1 %v661_v27 }
  0x25   :  { %2686 = vmatpush3.msra.mxu0 %v2947_v9  ;;  %2691 = vmatpush3.msra.mxu1 %v661_v27 }
  0x26   :  { %2687 = vmatprep.mubr.f32.mxu0 %v2967_v21  ;;  %2692 = vmatprep.mubr.f32.mxu1 %v2943_v7 }
  0x27   :  { %2695 = vmatprep.subr.mxu0 %v658_v16  ;;  %2693 = vmatmul.mubr.f32.vlgmr.msra.gmra.mxu1 %v2945_v8 }
  0x28   :  { %2688 = vmatmul.mubr.f32.vlgmr.msra.gmra.mxu0 %v2969_v22  ;;  %2700 = vmatprep.subr.mxu1 %v2947_v9 }
  0x29   :  { %2696 = vmatpush3.msra.mxu0 %v658_v16  ;;  %2701 = vmatpush3.msra.mxu1 %v2947_v9 }
  0x2a   :  { %2697 = vmatprep.mubr.f32.mxu0 %v2950_v11  ;;  %2702 = vmatprep.mubr.f32.mxu1 %v2957_v14 }
  0x2b   :  { %2705 = vmatprep.subr.mxu0 %v659_v23  ;;  %2703 = vmatmul.mubr.f32.vlgmr.msra.gmra.mxu1 %v2960_v15 }
  0x2c   :  { %2698 = vmatmul.mubr.f32.vlgmr.msra.gmra.mxu0 %v2954_v12  ;;  %2710 = vmatprep.subr.mxu1 %v2947_v9 }
  0x2d   :  { %2706 = vmatpush3.msra.mxu0 %v659_v23  ;;  %2711 = vmatpush3.msra.mxu1 %v2947_v9 }
  0x2e   :  { %2707 = vmatprep.mubr.f32.mxu0 %v2943_v7  ;;  %2712 = vmatprep.mubr.f32.mxu1 %v2943_v7 }
  0x2f   :  { %2715 = vmatprep.subr.mxu0 %v2977_v26  ;;  %2713 = vmatmul.mubr.f32.vlgmr.msra.gmra.mxu1 %v2945_v8 }
  0x30   :  { %2708 = vmatmul.mubr.f32.vlgmr.msra.gmra.mxu0 %v2945_v8  ;;  %2720 = vmatprep.subr.mxu1 %v1151_v33 }
  0x31   :  { %2716 = vmatpush3.msra.mxu0 %v2977_v26  ;;  %2721 = vmatpush3.msra.mxu1 %v1151_v33 }
  0x32   :  { %2717 = vmatprep.mubr.f32.mxu0 %v2967_v21  ;;  %2722 = vmatprep.mubr.f32.mxu1 %v2943_v7 }
  0x33   :  { %2725 = vmatprep.subr.mxu0 %v1148_v28  ;;  %2723 = vmatmul.mubr.f32.vlgmr.msra.gmra.mxu1 %v2945_v8 }
  0x34   :  { %2718 = vmatmul.mubr.f32.vlgmr.msra.gmra.mxu0 %v2969_v22  ;;  %2730 = vmatprep.subr.mxu1 %v2977_v26 }
  0x35   :  { %2726 = vmatpush3.msra.mxu0 %v1148_v28  ;;  %2731 = vmatpush3.msra.mxu1 %v2977_v26 }
  0x36   :  { %2727 = vmatprep.mubr.f32.mxu0 %v2950_v11  ;;  %2732 = vmatprep.mubr.f32.mxu1 %v2957_v14 }
  0x37   :  { %2735 = vmatprep.subr.mxu0 %v1149_v29  ;;  %2733 = vmatmul.mubr.f32.vlgmr.msra.gmra.mxu1 %v2960_v15 }
  0x38   :  { %2728 = vmatmul.mubr.f32.vlgmr.msra.gmra.mxu0 %v2954_v12  ;;  %2740 = vmatprep.subr.mxu1 %v2977_v26 }
  0x39   :  { %2736 = vmatpush3.msra.mxu0 %v1149_v29  ;;  %2741 = vmatpush3.msra.mxu1 %v2977_v26 }
  0x3a   :  { %2737 = vmatprep.mubr.f32.mxu0 %v2943_v7  ;;  %2742 = vmatprep.mubr.f32.mxu1 %v2943_v7 }
  0x3b   :  { %2745 = vmatprep.subr.mxu0 %v2995_v32  ;;  %2743 = vmatmul.mubr.f32.vlgmr.msra.gmra.mxu1 %v2945_v8 }
  0x3c   :  { %2738 = vmatmul.mubr.f32.vlgmr.msra.gmra.mxu0 %v2945_v8  ;;  %2750 = vmatprep.subr.mxu1 %v1641_v39 }
  0x3d   :  { %2746 = vmatpush3.msra.mxu0 %v2995_v32  ;;  %2751 = vmatpush3.msra.mxu1 %v1641_v39 }
  0x3e   :  { %2747 = vmatprep.mubr.f32.mxu0 %v2967_v21  ;;  %2752 = vmatprep.mubr.f32.mxu1 %v2943_v7 }
  0x3f   :  { %2755 = vmatprep.subr.mxu0 %v1638_v34  ;;  %2753 = vmatmul.mubr.f32.vlgmr.msra.gmra.mxu1 %v2945_v8 }
  0x40   :  { %2748 = vmatmul.mubr.f32.vlgmr.msra.gmra.mxu0 %v2969_v22  ;;  %2760 = vmatprep.subr.mxu1 %v2995_v32 }
  0x41   :  { %2756 = vmatpush3.msra.mxu0 %v1638_v34  ;;  %2761 = vmatpush3.msra.mxu1 %v2995_v32 }
  0x42   :  { %2757 = vmatprep.mubr.f32.mxu0 %v2950_v11  ;;  %2762 = vmatprep.mubr.f32.mxu1 %v2957_v14 }
  0x43   :  { %2765 = vmatprep.subr.mxu0 %v1639_v35  ;;  %2763 = vmatmul.mubr.f32.vlgmr.msra.gmra.mxu1 %v2960_v15 }
  0x44   :  { %2758 = vmatmul.mubr.f32.vlgmr.msra.gmra.mxu0 %v2954_v12  ;;  %2770 = vmatprep.subr.mxu1 %v2995_v32 }
  0x45   :  { %2766 = vmatpush3.msra.mxu0 %v1639_v35  ;;  %2771 = vmatpush3.msra.mxu1 %v2995_v32 }
  0x46   :  { %2767 = vmatprep.mubr.f32.mxu0 %v2943_v7  ;;  %2772 = vmatprep.mubr.f32.mxu1 %v2943_v7 }
  0x47   :  { %2775 = vmatprep.subr.mxu0 %v2067_v38  ;;  %2773 = vmatmul.mubr.f32.vlgmr.msra.gmra.mxu1 %v2945_v8 }
  0x48   :  { %2768 = vmatmul.mubr.f32.vlgmr.msra.gmra.mxu0 %v2945_v8  ;;  %2780 = vmatprep.subr.mxu1 %v2157_v43 }
  0x49   :  { %2776 = vmatpush3.msra.mxu0 %v2067_v38  ;;  %2777 = vmatprep.mubr.f32.mxu0 %v2967_v21 }
  0x4a   :  { %2782 = vmatprep.mubr.f32.mxu1 %v2943_v7  ;;  %2781 = vmatpush3.msra.mxu1 %v2157_v43 }
  0x4b   :  { %2785 = vmatprep.subr.mxu0 %v2154_v40  ;;  %2783 = vmatmul.mubr.f32.vlgmr.msra.gmra.mxu1 %v2945_v8 }
  0x4c   :  { %2778 = vmatmul.mubr.f32.vlgmr.msra.gmra.mxu0 %v2969_v22  ;;  %2790 = vmatprep.subr.mxu1 %v2067_v38 }
  0x4d   :  { %2786 = vmatpush3.msra.mxu0 %v2154_v40  ;;  %2787 = vmatprep.mubr.f32.mxu0 %v2950_v11 }
  0x4e   :  { %2792 = vmatprep.mubr.f32.mxu1 %v2957_v14  ;;  %2791 = vmatpush3.msra.mxu1 %v2067_v38 }
  0x4f   :  { %2795 = vmatprep.subr.mxu0 %v2155_v41  ;;  %2793 = vmatmul.mubr.f32.vlgmr.msra.gmra.mxu1 %v2960_v15 }
  0x50   :  { %2788 = vmatmul.mubr.f32.vlgmr.msra.gmra.mxu0 %v2954_v12  ;;  %2800 = vmatprep.subr.mxu1 %v2067_v38 }
  0x51   :  { %2796 = vmatpush3.msra.mxu0 %v2155_v41  ;;  %2797 = vmatprep.mubr.f32.mxu0 %v2943_v7 }
  0x52   :  { %2802 = vmatprep.mubr.f32.mxu1 %v2943_v7  ;;  %2801 = vmatpush3.msra.mxu1 %v2067_v38 }
  0x53   :  { %2803 = vmatmul.mubr.f32.vlgmr.msra.gmra.mxu1 %v2945_v8 }
  0x54   :  { %2798 = vmatmul.mubr.f32.vlgmr.msra.gmra.mxu0 %v2945_v8 }
  0xdb   :  { %v2664_v45 = vpop.f32.mrf.mxu1 }
  0xdc   :  { %v2659_v44 = vpop.f32.mrf.mxu0 }
  0xdd   :  { %v215_v46 = vadd.f32 %v2664_v45, %v2659_v44  ;;  %v208_v48 = vpop.f32.mrf.mxu1 }
  0xde   :  { %v122_v47 = vpop.f32.mrf.mxu0 }
  0xdf   :  { %v209_v49 = vadd.f32 %v208_v48, %v122_v47  ;;  %v2674_v51 = vpop.f32.mrf.mxu1 }
  0xe0   :  { %v2669_v50 = vpop.f32.mrf.mxu0 }
  0xe1   :  { %v296_v52 = vadd.f32 %v2669_v50, %v215_v46  ;;  %v369_v54 = vpop.f32.mrf.mxu1 }
  0xe2   :  { %v288_v53 = vpop.f32.mrf.mxu0 }
  0xe3   :  { %v378_v55 = vadd.f32 %v2674_v51, %v296_v52  ;;  %v289_v56 = vadd.f32 %v288_v53, %v209_v49  ;;  %v2684_v58 = vpop.f32.mrf.mxu1 }
  0xe4   :  { %v2679_v57 = vpop.f32.mrf.mxu0 }
  0xe5   :  { %v370_v59 = vadd.f32 %v369_v54, %v289_v56  ;;  %v458_v60 = vadd.f32 %v2679_v57, %v378_v55  ;;  %v529_v62 = vpop.f32.mrf.mxu1 }
  0xe6   :  { %v451_v61 = vpop.f32.mrf.mxu0 }
  0xe7   :  { %v3060_v63 = vadd.f32 %v2684_v58, %v458_v60  ;;  %v452_v0 = vadd.f32 %v451_v61, %v370_v59  ;;  %v2694_v2 = vpop.f32.mrf.mxu1 }
  0xe8   :  { %v2689_v1 = vpop.f32.mrf.mxu0 }
  0xe9   :  { %v3062_v3 = vadd.f32 %v529_v62, %v452_v0  ;;  %v705_v4 = vadd.f32 %v2694_v2, %v2689_v1  ;;  %v698_v6 = vpop.f32.mrf.mxu1 }
  0xea   :  { %v612_v5 = vpop.f32.mrf.mxu0 }
  0xeb   :  { %v699_v7 = vadd.f32 %v698_v6, %v612_v5  ;;  %v2704_v9 = vpop.f32.mrf.mxu1 }
  0xec   :  { %v2699_v8 = vpop.f32.mrf.mxu0 }
  0xed   :  { %v786_v10 = vadd.f32 %v2699_v8, %v705_v4  ;;  %v859_v12 = vpop.f32.mrf.mxu1 }
  0xee   :  { %v778_v11 = vpop.f32.mrf.mxu0 }
  0xef   :  { %v868_v13 = vadd.f32 %v2704_v9, %v786_v10  ;;  %v779_v14 = vadd.f32 %v778_v11, %v699_v7  ;;  %v2714_v16 = vpop.f32.mrf.mxu1 }
  0xf0   :  { %v2709_v15 = vpop.f32.mrf.mxu0 }
  0xf1   :  { %v860_v17 = vadd.f32 %v859_v12, %v779_v14  ;;  %v948_v18 = vadd.f32 %v2709_v15, %v868_v13  ;;  %v1019_v20 = vpop.f32.mrf.mxu1 }
  0xf2   :  { %v941_v19 = vpop.f32.mrf.mxu0 }
  0xf3   :  { %v3064_v21 = vadd.f32 %v2714_v16, %v948_v18  ;;  %v942_v22 = vadd.f32 %v941_v19, %v860_v17  ;;  %v2724_v24 = vpop.f32.mrf.mxu1 }
  0xf4   :  { %v2719_v23 = vpop.f32.mrf.mxu0 }
  0xf5   :  { %v3066_v25 = vadd.f32 %v1019_v20, %v942_v22  ;;  %v1188_v27 = vpop.f32.mrf.mxu1  ;;  %v1195_v28 = vadd.f32 %v2724_v24, %v2719_v23 }
  0xf6   :  { %v1102_v26 = vpop.f32.mrf.mxu0 }
  0xf7   :  { %v2734_v30 = vpop.f32.mrf.mxu1  ;;  %v1189_v31 = vadd.f32 %v1188_v27, %v1102_v26 }
  0xf8   :  { %v2729_v29 = vpop.f32.mrf.mxu0 }
  0xf9   :  { %v1276_v32 = vadd.f32 %v2729_v29, %v1195_v28  ;;  %v1349_v34 = vpop.f32.mrf.mxu1 }
  0xfa   :  { %v1268_v33 = vpop.f32.mrf.mxu0 }
  0xfb   :  { %v1269_v35 = vadd.f32 %v1268_v33, %v1189_v31  ;;  %v2744_v37 = vpop.f32.mrf.mxu1  ;;  %v1358_v38 = vadd.f32 %v2734_v30, %v1276_v32 }
  0xfc   :  { %v2739_v36 = vpop.f32.mrf.mxu0 }
  0xfd   :  { %v1350_v39 = vadd.f32 %v1349_v34, %v1269_v35  ;;  %v1509_v41 = vpop.f32.mrf.mxu1  ;;  %v1438_v45 = vadd.f32 %v2739_v36, %v1358_v38 }
  0xfe   :  { %v1431_v40 = vpop.f32.mrf.mxu0 }
  0xff   :  { %v1432_v42 = vadd.f32 %v1431_v40, %v1350_v39  ;;  %v2754_v44 = vpop.f32.mrf.mxu1  ;;  %v1516_v52 = vadd.f32 %v2744_v37, %v1438_v45 }
 0x100   :  { %v2749_v43 = vpop.f32.mrf.mxu0 }
 0x101   :  { %v1510_v46 = vadd.f32 %v1509_v41, %v1432_v42  ;;  %v1678_v48 = vpop.f32.mrf.mxu1  ;;  %v1685_v49 = vadd.f32 %v2754_v44, %v2749_v43 }
 0x102   :  { %v1592_v47 = vpop.f32.mrf.mxu0 }
 0x103   :  { %2011 = vrot.lane.b32.xlu0 %v1510_v46, %s2877_s5  ;;  %v2764_v51 = vpop.f32.mrf.mxu1  ;;  %v1679_v53 = vadd.f32 %v1678_v48, %v1592_v47 }
 0x104   :  { %v2759_v50 = vpop.f32.mrf.mxu0 }
 0x105   :  { %v1766_v54 = vadd.f32 %v2759_v50, %v1685_v49  ;;  %v1839_v56 = vpop.f32.mrf.mxu1 }
 0x106   :  { %v1758_v55 = vpop.f32.mrf.mxu0 }
 0x107   :  { %v1759_v57 = vadd.f32 %v1758_v55, %v1679_v53  ;;  %2013 = vrot.lane.b32.xlu0 %v1516_v52, %s2877_s5  ;;  %v2774_v59 = vpop.f32.mrf.mxu1  ;;  %v1848_v60 = vadd.f32 %v2764_v51, %v1766_v54 }
 0x108   :  { %v2769_v58 = vpop.f32.mrf.mxu0 }
 0x109   :  { %v1840_v61 = vadd.f32 %v1839_v56, %v1759_v57  ;;  %v1999_v0 = vpop.f32.mrf.mxu1  ;;  %v1928_v5 = vadd.f32 %v2769_v58, %v1848_v60 }
 0x10a   :  { %v1921_v62 = vpop.f32.mrf.mxu0 }
 0x10b   :  { %v1922_v1 = vadd.f32 %v1921_v62, %v1840_v61  ;;  %v2784_v4 = vpop.f32.mrf.mxu1  ;;  %v2006_v13 = vadd.f32 %v2774_v59, %v1928_v5 }
 0x10c   :  { %v2779_v2 = vpop.f32.mrf.mxu0 }
 0x10d   :  { %v2000_v6 = vadd.f32 %v1999_v0, %v1922_v1  ;;  %v2201_v7 = vadd.f32 %v2784_v4, %v2779_v2  ;;  %v2194_v9 = vpop.f32.mrf.mxu1 }
 0x10e   :  { %v2108_v8 = vpop.f32.mrf.mxu0 }
 0x10f   :  { %2025 = vrot.lane.b32.xlu1 %v2000_v6, %s2877_s5  ;;  %v2195_v10 = vadd.f32 %v2194_v9, %v2108_v8  ;;  %v2794_v12 = vpop.f32.mrf.mxu1 }
 0x110   :  { %v2789_v11 = vpop.f32.mrf.mxu0 }
 0x111   :  { %v2282_v14 = vadd.f32 %v2789_v11, %v2201_v7  ;;  %v2355_v16 = vpop.f32.mrf.mxu1 }
 0x112   :  { %v2274_v15 = vpop.f32.mrf.mxu0 }
 0x113   :  { %2027 = vrot.lane.b32.xlu1 %v2006_v13, %s2877_s5  ;;  %v2275_v17 = vadd.f32 %v2274_v15, %v2195_v10  ;;  %v2364_v18 = vadd.f32 %v2794_v12, %v2282_v14  ;;  %v2804_v20 = vpop.f32.mrf.mxu1 }
 0x114   :  { %v2799_v19 = vpop.f32.mrf.mxu0 }
 0x115   :  { %v2356_v22 = vadd.f32 %v2355_v16, %v2275_v17  ;;  %v2444_v23 = vadd.f32 %v2799_v19, %v2364_v18  ;;  %v2515_v26 = vpop.f32.mrf.mxu1 }
 0x116   :  { %v2437_v24 = vpop.f32.mrf.mxu0 }
 0x117   :  { %v2438_v27 = vadd.f32 %v2437_v24, %v2356_v22  ;;  %v2522_v28 = vadd.f32 %v2804_v20, %v2444_v23 }
 0x119   :  { %2527 = vst.msk [vmem:[%s3107_s8 + $0x8] sm:$0x3] %vm2526_vm1, %v2522_v28  ;;  %v2516_v29 = vadd.f32 %v2515_v26, %v2438_v27 }
 0x11b   :  { %2525 = vst.msk [vmem:[%s3107_s8] sm:$0xff] %vm43_vm0, %v2516_v29 }
 0x175   :  { %v2012_v30 = vpop.permute.xlu0 %2011 }
 0x176   :  { %v2017_v31 = vsel %vm43_vm0, %v3062_v3, %v2012_v30 }
 0x177   :  { %2020 = vst.msk [vmem:[#allocation5] sm:$0xff] %vm2019_vm2, %v2017_v31 }
 0x179   :  { %v2014_v32 = vpop.permute.xlu0 %2013 }
 0x17a   :  { %v2018_v33 = vsel %vm43_vm0, %v3060_v63, %v2014_v32 }
 0x17b   :  { %2022 = vst.msk [vmem:[#allocation5 + $0x8] sm:$0x3] %vm2021_vm3, %v2018_v33 }
 0x17c   :  { %2841 = shalt.err (!%p2838_p9)
}
 0x17d   :  { %s2879_s8 = smov 128   ;;  %s2880_s26 = smov [#allocation6]  }
 0x17e   :  { %2539 = dma.vmem_to_hbm [thread:$0]  %s2534_s22, 256, %s3105_s6, [#allocation4], %s2879_s8, %s2879_s8, %s2877_s5  }
 0x17f   :  { %s2545_s27 = sshll.u32 %s2880_s26, 4  ;;  %s2546_s27 = int_to_ptr.vmem [resolvable:$true] %s2545_s27 }
 0x180   :  { %s2850_s28 = scalar_lea.vmem %s2546_s27, 256  ;;  %p2855_p11 = scmp.lt.s32.totalorder %s2546_s27, %s2546_s27 }
 0x181   :  { %v2026_v3 = vpop.permute.xlu1 %2025  ;;  %p2851_p10 = scmp.ne.s32.totalorder %s2546_s27, %s2850_s28  ;;  %p2856_p12 = scmp.lt.s32.totalorder %s2850_s28, %s2850_s28 }
 0x182   :  { %v2031_v34 = vsel %vm43_vm0, %v3066_v25, %v2026_v3 }
 0x183   :  { %2033 = vst.msk [vmem:[#allocation6] sm:$0xff] %vm2019_vm2, %v2031_v34  ;;  %p2857_p13 = por %p2856_p12, %p2855_p11 }
 0x185   :  { %v2028_v63 = vpop.permute.xlu1 %2027  ;;  %p2858_p0 = pnand %p2857_p13, %p2851_p10 }
 0x186   :  { %v2032_v35 = vsel %vm43_vm0, %v3064_v21, %v2028_v63 }
 0x187   :  { %2034 = vst.msk [vmem:[#allocation6 + $0x8] sm:$0x3] %vm2021_vm3, %v2032_v35 }
 0x188   :  { %2861 = shalt.err (!%p2858_p0)
}
 0x189   :  { %2551 = dma.vmem_to_hbm [thread:$0]  %s2546_s27, 256, %s3106_s7, [#allocation7], %s2879_s8, %s2879_s8, %s2877_s5  }
 0x18a   :  { %2872 = dma.done.wait [#allocation4], 256  }
 0x18b   :  { %2873 = vsyncadd [#allocation4], 4294967040 }
 0x18c   :  { %2874 = dma.done.wait [#allocation7], 256  }
 0x18d   :  { %2875 = vsyncadd [#allocation7], 4294967040 }
 0x18e   :  { %2562 = vsyncpa [#allocation3], 1 }
 0x18f   :  { %2563 = vsyncpa [#allocation4], 1 }
 0x190   :  { %2564 = vsyncpa [#allocation7], 1 }

</bundles_post_ra>
